<compile_context>
chip_gen: v5e
topology: v5e:2x2
jax: 0.10.0
libtpu: 0.0.40
codegen_flags: <defaults>
</compile_context>

<pallas_src>
import jax
import jax.numpy as jnp
from jax.experimental import pallas as pl
from jax.experimental.pallas import tpu as pltpu

_LANES = 128     # vreg lane width
_SUBLANES = 8    # vreg sublane count (f32)


def _round_up(x: int, m: int) -> int:
    return ((x + m - 1) // m) * m


def _linear11_kernel(x_ref, wb_ref, o_ref):
    # x_ref:  (tile_rows, 128) VMEM tile of activations.
    # wb_ref: (2,) float32 SMEM scalars: [weight, bias].
    # o_ref:  (tile_rows, 128) VMEM output tile.
    w = wb_ref[0]
    b = wb_ref[1]
    x = x_ref[...].astype(jnp.float32)
    o_ref[...] = (x * w + b).astype(o_ref.dtype)


def linear_1_1(
    xs: jax.Array,
    weight: jax.Array,
    bias: jax.Array,
    *,
    tile_rows: int = 4096,          # 4096 x 128 x 4 B = 2 MiB per buffer
    min_pallas_elems: int = 1 << 20,
    donate_xs: bool = False,
) -> jax.Array:
    """Equivalent of torch.nn.Linear(1, 1)(xs) with xs of shape (N, 1)."""
    assert xs.ndim == 2 and xs.shape[1] == 1
    assert weight.shape == (1, 1)
    assert bias.shape == (1,)

    n = xs.shape[0]
    w = weight.reshape(()).astype(jnp.float32)
    b = bias.reshape(()).astype(jnp.float32)

    # Fallback: XLA's fused broadcast multiply-add is already at HBM roofline
    # for this op.  The Pallas path only pays off for large 128-aligned inputs
    # where it can stream with zero extra copies (no pad / slice).
    if n < min_pallas_elems or n % _LANES != 0:
        return (xs.astype(jnp.float32) * w + b).astype(xs.dtype)

    # --- Lane-dense view: (N, 1) -> (N/128, 128), metadata-only reshape. ---
    rows = n // _LANES
    x2d = xs.reshape(rows, _LANES)

    # Tile rows: multiple of 8 sublanes; capped so the grid has >= 4 blocks
    # when possible (lets the "parallel" axis shard across both TensorCores
    # on v7x) and blocks stay ~2 MiB so double-buffered in+out (~8 MiB total)
    # fits comfortably under the default scoped-VMEM limit on every chip.
    tr_cap = max(_SUBLANES, _round_up(pl.cdiv(rows, 4), _SUBLANES))
    tr = max(_SUBLANES, min(_round_up(tile_rows, _SUBLANES), tr_cap))
    grid = pl.cdiv(rows, tr)        # ragged last block handled by Pallas masking

    # Scalar parameters, kept float32 on the SMEM scalar path.
    wb = jnp.stack([w, b])

    itemsize = jnp.dtype(xs.dtype).itemsize
    cost = pl.CostEstimate(
        flops=2 * n, transcendentals=0, bytes_accessed=2 * n * itemsize
    )

    out2d = pl.pallas_call(
        _linear11_kernel,
        out_shape=jax.ShapeDtypeStruct((rows, _LANES), xs.dtype),
        grid=(grid,),
        in_specs=[
            pl.BlockSpec((tr, _LANES), lambda i: (i, 0)),
            pl.BlockSpec(memory_space=pltpu.MemorySpace.SMEM),
        ],
        out_specs=pl.BlockSpec((tr, _LANES), lambda i: (i, 0)),
        compiler_params=pltpu.CompilerParams(
            dimension_semantics=("parallel",),
        ),
        cost_estimate=cost,
        input_output_aliases={0: 0} if donate_xs else {},
    )(x2d, wb)

    # Metadata-only reshape back to the (N, 1) Linear output shape.
    return out2d.reshape(n, 1)


if __name__ == "__main__":
    key = jax.random.PRNGKey(0)
    k_w, k_b, k1, k2, k3 = jax.random.split(key, 5)

    # Deterministic synthetic parameters (shapes from nn.Linear(1, 1)).
    weight = jax.random.normal(k_w, (1, 1), dtype=jnp.float32)  # (out, in)
    bias = jax.random.normal(k_b, (1,), dtype=jnp.float32)      # (out,)

    def ref_fn(xs):
        return xs @ weight.T + bias

    # --- Pallas path with a ragged last grid block (rows=20, tr=8, grid=3).
    xs1 = jax.random.normal(k1, (2560, 1), dtype=jnp.float32)
    ys1 = linear_1_1(xs1, weight, bias, min_pallas_elems=0)
    jax.block_until_ready(ys1)
    assert ys1.shape == (2560, 1), ys1.shape
    assert jnp.allclose(ys1, ref_fn(xs1), atol=1e-6), "pallas ragged-grid mismatch"

    # --- Pallas path with an exact multi-step grid (rows=24, tr=8, grid=3).
    xs2 = jax.random.normal(k2, (3072, 1), dtype=jnp.float32)
    ys2 = linear_1_1(xs2, weight, bias, min_pallas_elems=0)
    jax.block_until_ready(ys2)
    assert jnp.allclose(ys2, ref_fn(xs2), atol=1e-6), "pallas exact-grid mismatch"

    # --- Small / unaligned N: fused XLA fallback path (no kernel launch).
    xs3 = jax.random.normal(k3, (1000, 1), dtype=jnp.float32)
    ys3 = linear_1_1(xs3, weight, bias)
    jax.block_until_ready(ys3)
    assert jnp.allclose(ys3, ref_fn(xs3), atol=1e-6), "fallback path mismatch"

    print("KERNEL_OK")
</pallas_src>

<mosaic_0001>
module attributes {stable_mosaic.version = 11 : i64} {
  func.func @_linear11_kernel(%arg0: i32, %arg1: memref<8x128xf32, #tpu.memory_space<vmem>>, %arg2: memref<2xf32, #tpu.memory_space<smem>>, %arg3: memref<8x128xf32, #tpu.memory_space<vmem>>) attributes {dimension_semantics = [#tpu.dimension_semantics<parallel>], iteration_bounds = array<i64: 3>, scalar_prefetch = 0 : i64, scratch_operands = 0 : i64, tpu.core_type = #tpu.core_type<tc>, window_params = [{transform_indices = @transform_0, window_bounds = array<i64: 8, 128>}, {transform_indices = @transform_1, window_bounds = array<i64: 2>}, {transform_indices = @transform_2, window_bounds = array<i64: 8, 128>}]} {
    %c0 = arith.constant 0 : index
    %0 = memref.load %arg2[%c0] : memref<2xf32, #tpu.memory_space<smem>>
    %c1 = arith.constant 1 : index
    %1 = memref.load %arg2[%c1] : memref<2xf32, #tpu.memory_space<smem>>
    %c0_0 = arith.constant 0 : index
    %c0_1 = arith.constant 0 : index
    %2 = vector.load %arg1[%c0_0, %c0_1] : memref<8x128xf32, #tpu.memory_space<vmem>>, vector<8x128xf32>
    %3 = vector.broadcast %0 : f32 to vector<8x128xf32>
    %4 = arith.mulf %2, %3 : vector<8x128xf32>
    %5 = vector.broadcast %1 : f32 to vector<8x128xf32>
    %6 = arith.addf %4, %5 : vector<8x128xf32>
    %c0_2 = arith.constant 0 : index
    %c0_3 = arith.constant 0 : index
    %7 = vector.load %arg3[%c0_2, %c0_3] : memref<8x128xf32, #tpu.memory_space<vmem>>, vector<8x128xf32>
    tpu.vector_store %arg3[%c0_2, %c0_3], %6 {strides = array<i32>} : memref<8x128xf32, #tpu.memory_space<vmem>>, vector<8x128xf32>,
    return
  }
  func.func @transform_0(%arg0: i32) -> (i32, i32) {
    %c0_i32 = arith.constant 0 : i32
    %c0_i32_0 = arith.constant 0 : i32
    return %arg0, %c0_i32 : i32, i32
  }
  func.func @transform_1(%arg0: i32) -> i32 {
    %c0_i32 = arith.constant 0 : i32
    %c0_i32_0 = arith.constant 0 : i32
    return %c0_i32 : i32
  }
  func.func @transform_2(%arg0: i32) -> (i32, i32) {
    %c0_i32 = arith.constant 0 : i32
    %c0_i32_0 = arith.constant 0 : i32
    return %arg0, %c0_i32 : i32, i32
  }
}

</mosaic_0001>

<bundles_post_ra>
// kernel: tpu_custom_call.1
= control target key start
LH: loop header
LB: loop body
LE: loop exit
PB: predicated region body
PF: predicated region fallthrough
CT: control target
= control target key end

     0   :  { %7 = vsyncpa [#allocation3], 0  ;;  %s622_s0 = inlined_call_operand.hbm [shape: f32[20,128], index: 0, kind: input, shape index: {}]   ;;  %s623_s1 = inlined_call_operand.hbm [shape: f32[2], index: 1, kind: input, shape index: {}]   ;;  %s624_s2 = inlined_call_operand.hbm [shape: f32[20,128], index: 2, kind: output, shape index: {}]  }
   0x1   :  { %9 = vsyncpa [#allocation3 + $0x1], 0 }
   0x2   :  { %10 = vsyncpa [#allocation5], 0 }
   0x3   :  { %11 = vsyncpa [#allocation4], 0 }
   0x4   :  { %13 = vsyncpa [#allocation4 + $0x1], 0  ;;  %s486_s9 = smov 0   ;;  %s488_s10 = smov 0  }
   0x5   :  { %s490_s11 = smov 0   ;;  %s492_s12 = smov 0  }
   0x6 LB: > { %s507_s13 = sadd.s32 4294967295, %s468_s12   ;;  %s281_s14 = sadd.s32 4294967294, %s468_s12   ;;  %s468_s12 = sphi %s492_s12, %s633_s12   ;;  %s464_s11 = sphi %s490_s11, %s632_s11   ;;  %s460_s10 = sphi %s488_s10, %s631_s10   ;;  %s456_s9 = sphi %s486_s9, %s630_s9  }
   0x7   : > { %p39_p0 = scmp.ne.s32.totalorder %s460_s10, %s456_s9  ;;  %p40_p1 = scmp.eq.s32.totalorder %s507_s13, 0 }
   0x8   : > { %p84_p2 = scmp.eq.s32.totalorder %s507_s13, 2  ;;  %p90_p3 = scmp.eq.s32.totalorder %s281_s14, 2 }
   0x9   : > { %p516_p4 = por %p40_p1, %p39_p0  ;;  %p282_p5 = scmp.ge.s32.totalorder %s468_s12, 1 }
   0xa   : > { %p521_p6 = por %p90_p3, %p39_p0  ;;  %p97_p7 = scmp.lt.s32.totalorder %s468_s12, 4 }
   0xb   : > { %s109_s19 = sshll.u32 %s623_s1, 4  ;;  %s536_s21 = sadd.s32 1, %s468_s12   ;;  %s110_s19 = int_to_ptr.hbm [resolvable:$true] %s109_s19 }
   0xc   : > { %p529_p8 = pnand %p282_p5, %p97_p7  ;;  %s23_s22 = ssub.s32 %s468_s12, %s536_s21 }
   0xd   : > { %p24_p11 = scmp.eq.s32.totalorder %s23_s22, 0  ;;  %s26_s23 = sadd.s32 1, %s464_s11 }
   0xe   : > { %p304_p9 = pneg %p529_p8  ;;  %p33_p12 = scmp.ne.s32.totalorder %s464_s11, %s460_s10 }
   0xf   : > { %s470_s24 = smov [#allocation6]   ;;  %p34_p13 = scmp.eq.s32.totalorder %s468_s12, 0 }
  0x10   : > { %p305_p10 = pnand %p304_p9, %p40_p1  ;;  %p551_p0 = por %p84_p2, %p33_p12 }
  0x11   : > { %s546_s25 = scalar_select %p24_p11, %s464_s11, %s26_s23  }
  0x12   : > { %307 = dma.hbm_to_smem (!%p305_p10), %s110_s19, 16, %s470_s24, [#allocation5]  }
  0x13   : > { %s120_s27 = sand.u32 1, %s464_s11   ;;  %p35_p3 = por %p34_p13, %p33_p12 }
  0x14   : > { %p317_p5 = scmp.lt.s32.totalorder %s468_s12, 3  ;;  %s285_s28 = sshll.u32 %s120_s27, 3 }
  0x15   : > { %s286_s29 = sshll.u32 %s468_s12, 3  ;;  %s124_s6 = scalar_lea.vmem [#allocation2], %s285_s28 }
  0x16   : > { %s128_s4 = scalar_lea.hbm %s622_s0, %s286_s29  ;;  %s132_s7 = sshll.u32 %s124_s6, 4  ;;  %s133_s7 = int_to_ptr.vmem [resolvable:$true] %s132_s7 }
  0x17   : > { %s130_s5 = sshll.u32 %s128_s4, 4  ;;  %p561_p7 = pnand %p317_p5, %p35_p3  ;;  %s131_s5 = int_to_ptr.hbm [resolvable:$true] %s130_s5 }
  0x18   : > { %s121_s14 = scalar_lea.sflag [#allocation3], %s120_s27  ;;  %s368_s17 = sshra.s32 %s131_s5, 4  ;;  %s369_s17 = int_to_ptr.hbm [resolvable:$true] %s368_s17 }
  0x19   : > { %s370_s18 = scalar_lea.hbm %s369_s17, 8  ;;  %p372_p9 = pneg %p561_p7 }
  0x1a   : > { %p371_p2 = scmp.ne.s32.totalorder %s369_s17, %s370_s18  ;;  %s375_s23 = scalar_lea.hbm %s622_s0, 24 }
  0x1b   : > { %p376_p12 = scmp.lt.s32.totalorder %s369_s17, %s622_s0  ;;  %p377_p13 = scmp.lt.s32.totalorder %s375_s23, %s370_s18 }
  0x1c   : > { %p373_p10 = pnand %p372_p9, %p371_p2 }
  0x1d   : > { %p378_p3 = por %p377_p13, %p376_p12 }
  0x1e   : > { %p374_p11 = pneg %p373_p10 }
  0x20   : > { %p379_p5 = pnand %p378_p3, %p374_p11 }
  0x22   : > { %382 = shalt.err (!%p379_p5)
}
  0x23   : > { %311 = dma.hbm_to_vmem [thread:$0]  (!%p561_p7), %s131_s5, 128, %s133_s7, %s121_s14  }
  0x24   : > { %141 = sbr.rel (%p529_p8) target bundleno = 62 (0x3e), region = 28  ;;  %s578_s27 = sand.u32 (!%p529_p8), 1, %s460_s10  }
  0x25   : > { %s288_s29 = sshll.u32 (!%p529_p8), %s578_s27, 3  ;;  %s144_s30 = scalar_lea.sflag (!%p529_p8), [#allocation3], %s578_s27 }
  0x26   : > { %s147_s3 = scalar_lea.vmem (!%p529_p8), [#allocation2], %s288_s29 }
  0x29   : > { %443 = dma.done.wait (%p516_p4), %s144_s30, 128  }
  0x2a   : > { %445 = vsyncadd (%p516_p4), %s144_s30, 4294967168 }
  0x2b   : > { %447 = dma.done.wait (%p40_p1), [#allocation5], 16  }
  0x2c   : > { %449 = vsyncadd (%p40_p1), [#allocation5], 4294967280 }
  0x2d   : > { %158 = sfence }
  0x2e   : > { %s175_s20 = sld [smem:[#allocation6]]  ;;  %s293_s5 = sshll.u32 %s507_s13, 3  ;;  %v177_v0 = vld [vmem:[%s147_s3] sm:$0xff] }
  0x2f   : > { %s291_s4 = sld [smem:[#allocation6 + $0x1]]  ;;  %s194_s8 = scalar_lea.hbm %s624_s2, %s293_s5 }
  0x30   : > { %s174_s15 = scalar_lea.vmem [#allocation7], %s288_s29  ;;  %s198_s17 = sshll.u32 %s194_s8, 4  ;;  %s199_s17 = int_to_ptr.hbm [resolvable:$true] %s198_s17 }
  0x31   : > { %s196_s14 = sshll.u32 %s174_s15, 4  ;;  %s184_s18 = scalar_lea.sflag [#allocation4], %s578_s27  ;;  %s197_s14 = int_to_ptr.vmem [resolvable:$true] %s196_s14 }
  0x32   : > { %s412_s19 = sshra.s32 %s199_s17, 4  ;;  %s418_s24 = scalar_lea.hbm %s624_s2, 24  ;;  %s413_s19 = int_to_ptr.hbm [resolvable:$true] %s412_s19 }
  0x33   : > { %s414_s13 = scalar_lea.hbm %s413_s19, 8  ;;  %p419_p7 = scmp.lt.s32.totalorder %s413_s19, %s624_s2 }
  0x34   : > { %v178_v1 = vstv %s175_s20  ;;  %p415_p1 = scmp.ne.s32.totalorder %s413_s19, %s414_s13  ;;  %p420_p2 = scmp.lt.s32.totalorder %s418_s24, %s414_s13 }
  0x35   : > { %v179_v2 = vmul.f32 %v178_v1, %v177_v0  ;;  %v180_v3 = vstv %s291_s4 }
  0x36   : > { %p416_p4 = pnand %p415_p1, %p551_p0  ;;  %p421_p9 = por %p420_p2, %p419_p7 }
  0x37   : > { %v181_v4 = vadd.f32 %v180_v3, %v179_v2 }
  0x38   : > { %p417_p8 = pneg %p416_p4 }
  0x39   : > { %182 = vst [vmem:[%s174_s15] sm:$0xff] %v181_v4 }
  0x3a   : > { %p422_p10 = pnand %p421_p9, %p417_p8 }
  0x3c   : > { %425 = shalt.err (!%p422_p10)
}
  0x3d   : > { %302 = dma.vmem_to_hbm [thread:$0]  (%p551_p0), %s197_s14, 128, %s199_s17, %s184_s18  }
  0x3e PF: > { %p319_p11 = scmp.ge.s32.totalorder %s468_s12, 2  ;;  %s210_s27 = sand.u32 1, %s456_s9  }
  0x3f   : > { %s211_s30 = scalar_lea.sflag [#allocation4], %s210_s27 }
  0x40   : > { %p313_p12 = pnand %p319_p11, %p521_p6 }
  0x42   : > { %p314_p13 = pneg %p313_p12 }
  0x44   : > { %451 = dma.done.wait (%p314_p13), %s211_s30, 128  }
  0x45   : > { %453 = vsyncadd (%p314_p13), %s211_s30, 4294967168  ;;  %p16_p3 = scmp.ge.s32.totalorder %s536_s21, 5   ;;  %s630_s9 = smov %s460_s10 }
  0x46   : > { %s631_s10 = smov %s464_s11  ;;  %s632_s11 = smov %s546_s25 }
  0x47   : > { %s633_s12 = smov %s536_s21  ;;  %18 = sbr.rel (!%p16_p3) target bundleno = 6 (0x6), region = 78 }
  0x4c   :  { %217 = vsyncpa [#allocation3], 1 }
  0x4d   :  { %219 = vsyncpa [#allocation3 + $0x1], 1 }
  0x4e   :  { %220 = vsyncpa [#allocation4], 1 }
  0x4f   :  { %222 = vsyncpa [#allocation4 + $0x1], 1 }
  0x50   :  { %223 = vsyncpa [#allocation5], 1 }
  0x51   :  { %225 = vsyncpa [#allocation5 + $0x1], 1 }

</bundles_post_ra>
